<compile_context>
chip_gen: v6e
topology: v6e:2x2x1
jax: 0.10.0
libtpu: 0.0.40
codegen_flags: <defaults>
</compile_context>

<pallas_src>
import functools

import jax
import jax.numpy as jnp
import numpy as np
from jax.experimental import pallas as pl
from jax.experimental.pallas import tpu as pltpu


def _dino_loss_kernel(inv_temp_ref,       # SMEM scalar prefetch, (1,) f32
                      student_ref,        # VMEM (TB, D)     student crop v, row tile r
                      teacher_ref,        # VMEM (2, TB, D)  both teacher crops, row tile r
                      center_ref,         # VMEM (1, D)      resident
                      loss_part_ref,      # VMEM (1, D)      lane-dense per-r partial loss
                      center_part_ref,    # VMEM (1, D)      per-r raw teacher row-sum
                      q_sc,               # VMEM (2, TB, D)  scratch: teacher softmax q0, q1
                      *, inv_student_temp):
    v = pl.program_id(1)                  # student crop index (innermost)

    # ---- teacher work: once per row tile r, reused for every student crop ----
    @pl.when(v == 0)
    def _teacher():
        teacher = teacher_ref[...].astype(jnp.float32)               # (2, TB, D)

        # raw teacher row-sum of this row tile (for the center EMA update)
        center_part_ref[...] = jnp.sum(teacher[0] + teacher[1], axis=0,
                                       keepdims=True)                # (1, D)

        # softmax((teacher - center) * inv_temp, axis=-1); exact reciprocal:
        # 2*TB divides per tile is negligible next to 2*TB*D exps.
        t = (teacher - center_ref[...].astype(jnp.float32)) * inv_temp_ref[0]
        t = t - jnp.max(t, axis=-1, keepdims=True)
        e = jnp.exp(t)
        q = e / jnp.sum(e, axis=-1, keepdims=True)
        q_sc[0] = q[0]
        q_sc[1] = q[1]

        # init the lane-dense loss accumulator (resident output block for r)
        loss_part_ref[...] = jnp.zeros_like(loss_part_ref)

    # ---- student log_softmax for crop v, current row tile ----
    s = student_ref[...].astype(jnp.float32) * inv_student_temp      # (TB, D)
    s = s - jnp.max(s, axis=-1, keepdims=True)
    log_z = jnp.log(jnp.sum(jnp.exp(s), axis=-1, keepdims=True))
    lp = s - log_z                                                   # (TB, D)

    # ---- loss contraction: static branches, sublane-only reduce per step ----
    #   v == 0 -> q1 ; v == 1 -> q0 ; v >= 2 -> q0 + q1 (factored local crops)
    # Accumulate into the lane-dense (1, D) resident output; the cross-lane
    # reduction and the -1/(B*n_terms) scale happen once in the wrapper.
    @pl.when(v == 0)
    def _():
        loss_part_ref[...] += jnp.sum(q_sc[1] * lp, axis=0, keepdims=True)

    @pl.when(v == 1)
    def _():
        loss_part_ref[...] += jnp.sum(q_sc[0] * lp, axis=0, keepdims=True)

    @pl.when(v >= 2)
    def _():
        loss_part_ref[...] += jnp.sum((q_sc[0] + q_sc[1]) * lp, axis=0,
                                      keepdims=True)


def _vmem_footprint(row_tile, d, itemsize):
    """Per-iteration VMEM bytes: double-buffered tiles + resident scratch."""
    inputs = 2 * (1 + 2) * row_tile * d * itemsize   # student + teacher, 2 bufs each
    outputs = 2 * 2 * d * 4                          # two (1, d) f32 out blocks, 2 bufs
    center = 2 * d * 4
    scratch = 2 * row_tile * d * 4                   # q_sc (f32)
    return inputs + outputs + center + scratch


def _pick_row_tile(b, d, itemsize, budget_bytes):
    """Largest sublane-aligned divisor of b whose footprint fits ~70% of VMEM."""
    sub = 16 if itemsize < 4 else 8
    cands = [t for t in range(sub, b + 1, sub) if b % t == 0]
    if b not in cands:
        cands.append(b)                              # full extent is always legal
    cands.sort()
    best = cands[0]
    for t in cands:
        if _vmem_footprint(t, d, itemsize) <= 0.7 * budget_bytes:
            best = t
    return best


def dino_loss(student_output, teacher_output, center, teacher_temp, *,
              ncrops=4, student_temp=0.1, center_momentum=0.9,
              row_tile=None, vmem_limit_bytes=None):
    """DINO loss forward. Returns (loss f32 scalar, new_center (1, D) f32)."""
    s_rows, d = student_output.shape
    t_rows, d2 = teacher_output.shape
    assert d == d2 and s_rows % ncrops == 0 and t_rows % 2 == 0
    b = s_rows // ncrops
    assert t_rows == 2 * b

    # Per-generation VMEM budget (64 MiB on v7x, 128 MiB on v5e/v6e).
    try:
        budget = int(getattr(pltpu.get_tpu_info(), "vmem_capacity_bytes", 64 << 20))
    except Exception:  # pragma: no cover - defensive fallback
        budget = 64 << 20

    itemsize = student_output.dtype.itemsize
    if row_tile is None:
        row_tile = _pick_row_tile(b, d, itemsize, budget)
    assert b % row_tile == 0 and (row_tile % 8 == 0 or row_tile == b)
    n_row_tiles = b // row_tile

    if vmem_limit_bytes is None:
        fp = _vmem_footprint(row_tile, d, itemsize)
        vmem_limit_bytes = int(min(budget, max(fp + (4 << 20), 16 << 20)))

    # Reciprocal temperatures (multiply instead of per-element divide).
    inv_temp = (1.0 / jnp.asarray(teacher_temp, dtype=jnp.float32)).reshape(1)
    inv_student_temp = 1.0 / float(student_temp)

    student3 = student_output.reshape(ncrops, b, d)
    teacher3 = teacher_output.reshape(2, b, d)

    kernel = functools.partial(_dino_loss_kernel,
                               inv_student_temp=inv_student_temp)

    # EUP / bandwidth-heavy kernel with no MXU work: tell XLA about it.
    bytes_accessed = (student_output.size * itemsize
                      + teacher_output.size * teacher_output.dtype.itemsize
                      + center.size * 4
                      + 2 * n_row_tiles * d * 4)
    cost = pl.CostEstimate(
        flops=int(8 * (ncrops + 2) * b * d),
        transcendentals=int((ncrops + 2) * b * d + ncrops * b),
        bytes_accessed=int(bytes_accessed),
    )

    loss_part, center_part = pl.pallas_call(
        kernel,
        out_shape=(
            jax.ShapeDtypeStruct((n_row_tiles, 1, d), jnp.float32),
            jax.ShapeDtypeStruct((n_row_tiles, 1, d), jnp.float32),
        ),
        grid_spec=pltpu.PrefetchScalarGridSpec(
            num_scalar_prefetch=1,
            grid=(n_row_tiles, ncrops),            # v innermost: teacher tile reused
            in_specs=[
                # student crop v, row tile r (leading crop axis squeezed)
                pl.BlockSpec((None, row_tile, d), lambda r, v, it: (v, r, 0)),
                # both teacher crops for row tile r (block index constant over v)
                pl.BlockSpec((2, row_tile, d), lambda r, v, it: (0, r, 0)),
                # center stays resident
                pl.BlockSpec((1, d), lambda r, v, it: (0, 0)),
            ],
            out_specs=(
                # lane-dense per-row-tile partials, resident across v
                pl.BlockSpec((None, 1, d), lambda r, v, it: (r, 0, 0)),
                pl.BlockSpec((None, 1, d), lambda r, v, it: (r, 0, 0)),
            ),
            scratch_shapes=[pltpu.VMEM((2, row_tile, d), jnp.float32)],
        ),
        compiler_params=pltpu.CompilerParams(
            # row tiles are fully independent (per-r partial outputs) -> parallel
            # (megacore split on v7x); the crop axis accumulates -> arbitrary.
            dimension_semantics=("parallel", "arbitrary"),
            vmem_limit_bytes=vmem_limit_bytes,
        ),
        cost_estimate=cost,
    )(inv_temp, student3, teacher3, center)

    # Tiny wrapper-side finalization: single cross-lane reduce + scaling + EMA.
    n_terms = 2 * (ncrops - 1)
    loss = -jnp.sum(loss_part) / (b * n_terms)
    batch_center = jnp.sum(center_part, axis=0) / (2.0 * b)          # (1, D)
    # TODO(synk): dist.all_reduce of batch_center not modelled (world_size == 1).
    new_center = (center.astype(jnp.float32) * center_momentum
                  + batch_center * (1.0 - center_momentum))
    return loss, new_center


def _reference(student_output, teacher_output, center, temp,
               ncrops, student_temp, center_momentum):
    """Pure-JAX reference mirroring the PyTorch forward (world_size = 1)."""
    student_out = student_output / student_temp
    student_chunks = jnp.split(student_out, ncrops, axis=0)
    teacher_out = jax.nn.softmax((teacher_output - center) / temp, axis=-1)
    teacher_chunks = jnp.split(teacher_out, 2, axis=0)

    total_loss = 0.0
    n_loss_terms = 0
    for iq, q in enumerate(teacher_chunks):
        for v in range(len(student_chunks)):
            if v == iq:
                continue
            loss = jnp.sum(-q * jax.nn.log_softmax(student_chunks[v], axis=-1),
                           axis=-1)
            total_loss += loss.mean()
            n_loss_terms += 1
    total_loss /= n_loss_terms

    batch_center = jnp.sum(teacher_output, axis=0, keepdims=True)
    batch_center = batch_center / teacher_output.shape[0]
    new_center = center * center_momentum + batch_center * (1 - center_momentum)
    return total_loss, new_center


if __name__ == "__main__":
    # Small synthetic shapes consistent with DINOLoss.forward.
    ncrops = 4
    batch = 32          # samples per crop
    out_dim = 256       # lane-aligned "projection head" dimension
    student_temp = 0.1
    center_momentum = 0.9
    warmup_teacher_temp, teacher_temp = 0.04, 0.04
    warmup_epochs, nepochs = 10, 200
    teacher_temp_schedule = np.concatenate((
        np.linspace(warmup_teacher_temp, teacher_temp, warmup_epochs),
        np.ones(nepochs - warmup_epochs) * teacher_temp,
    ))
    epoch = 5
    temp = float(teacher_temp_schedule[epoch])   # concrete schedule lookup on host

    key = jax.random.PRNGKey(0)
    k1, k2 = jax.random.split(key)
    # Keep the network outputs bf16 in HBM (kernel is bandwidth/EUP bound, no
    # MXU use); the kernel casts to f32 internally.
    student_output = jax.random.normal(
        k1, (ncrops * batch, out_dim), dtype=jnp.float32).astype(jnp.bfloat16)
    teacher_output = jax.random.normal(
        k2, (2 * batch, out_dim), dtype=jnp.float32).astype(jnp.bfloat16)
    center = jnp.zeros((1, out_dim), dtype=jnp.float32)   # buffer init (zeros)

    ref_loss, ref_center = _reference(
        student_output.astype(jnp.float32), teacher_output.astype(jnp.float32),
        center, temp, ncrops, student_temp, center_momentum,
    )

    # 1) VMEM-aware automatic row_tile (single row tile at this small shape).
    loss_a, center_a = dino_loss(
        student_output, teacher_output, center, temp,
        ncrops=ncrops, student_temp=student_temp,
        center_momentum=center_momentum,
    )
    # 2) Explicit smaller tile: 2 row tiles x 4 crops exercises the pipeline,
    #    the per-r partial outputs and the parallel row-tile axis.
    loss_b, center_b = dino_loss(
        student_output, teacher_output, center, temp,
        ncrops=ncrops, student_temp=student_temp,
        center_momentum=center_momentum, row_tile=16,
    )
    jax.block_until_ready((loss_a, center_a, loss_b, center_b))

    for loss, new_center in ((loss_a, center_a), (loss_b, center_b)):
        np.testing.assert_allclose(np.asarray(loss), np.asarray(ref_loss),
                                   rtol=3e-4, atol=1e-5)
        np.testing.assert_allclose(np.asarray(new_center), np.asarray(ref_center),
                                   rtol=1e-5, atol=1e-6)

    print("KERNEL_OK")
</pallas_src>

<mosaic_0001>
module attributes {stable_mosaic.version = 11 : i64} {
  func.func @_dino_loss_kernel(%arg0: i32, %arg1: i32, %arg2: memref<1xf32, #tpu.memory_space<smem>>, %arg3: memref<1x32x256xbf16, #tpu.memory_space<vmem>>, %arg4: memref<2x32x256xbf16, #tpu.memory_space<vmem>>, %arg5: memref<1x256xf32, #tpu.memory_space<vmem>>, %arg6: memref<1x1x256xf32, #tpu.memory_space<vmem>>, %arg7: memref<1x1x256xf32, #tpu.memory_space<vmem>>, %arg8: memref<2x32x256xf32, #tpu.memory_space<vmem>>) attributes {dimension_semantics = [#tpu.dimension_semantics<parallel>, #tpu.dimension_semantics<arbitrary>], iteration_bounds = array<i64: 1, 4>, scalar_prefetch = 1 : i64, scratch_operands = 1 : i64, tpu.core_type = #tpu.core_type<tc>, window_params = [{transform_indices = @transform_0, window_bounds = array<i64: 1, 32, 256>}, {transform_indices = @transform_1, window_bounds = array<i64: 2, 32, 256>}, {pipeline_mode = #tpu.pipeline_mode<synchronous>, transform_indices = @transform_2, window_bounds = array<i64: 1, 256>}, {transform_indices = @transform_3, window_bounds = array<i64: 1, 1, 256>}, {transform_indices = @transform_4, window_bounds = array<i64: 1, 1, 256>}]} {
    %c0_i32 = arith.constant 0 : i32
    %0 = arith.cmpi eq, %arg1, %c0_i32 : i32
    %1 = arith.extui %0 : i1 to i32
    %c0_i32_0 = arith.constant 0 : i32
    %2 = arith.cmpi ne, %1, %c0_i32_0 : i32
    scf.if %2 {
      %c0_9 = arith.constant 0 : index
      %c0_10 = arith.constant 0 : index
      %c0_11 = arith.constant 0 : index
      %27 = vector.load %arg4[%c0_9, %c0_10, %c0_11] : memref<2x32x256xbf16, #tpu.memory_space<vmem>>, vector<2x32x256xbf16>
      %28 = arith.extf %27 : vector<2x32x256xbf16> to vector<2x32x256xf32>
      %29 = vector.extract_strided_slice %28 {offsets = [0, 0, 0], sizes = [1, 32, 256], strides = [1, 1, 1]} : vector<2x32x256xf32> to vector<1x32x256xf32>
      %30 = vector.shape_cast %29 : vector<1x32x256xf32> to vector<32x256xf32>
      %31 = vector.extract_strided_slice %28 {offsets = [1, 0, 0], sizes = [1, 32, 256], strides = [1, 1, 1]} : vector<2x32x256xf32> to vector<1x32x256xf32>
      %32 = vector.shape_cast %31 : vector<1x32x256xf32> to vector<32x256xf32>
      %33 = arith.addf %30, %32 : vector<32x256xf32>
      %cst_12 = arith.constant dense<0.000000e+00> : vector<256xf32>
      %34 = vector.multi_reduction <add>, %33, %cst_12 [0] : vector<32x256xf32> to vector<256xf32>
      %35 = vector.shape_cast %34 : vector<256xf32> to vector<1x256xf32>
      %c0_13 = arith.constant 0 : index
      %c0_14 = arith.constant 0 : index
      %c0_15 = arith.constant 0 : index
      %36 = vector.load %arg7[%c0_13, %c0_14, %c0_15] : memref<1x1x256xf32, #tpu.memory_space<vmem>>, vector<1x1x256xf32>
      %37 = vector.shape_cast %36 : vector<1x1x256xf32> to vector<1x256xf32>
      %38 = vector.shape_cast %35 : vector<1x256xf32> to vector<1x1x256xf32>
      tpu.vector_store %arg7[%c0_13, %c0_14, %c0_15], %38 {strides = array<i32>} : memref<1x1x256xf32, #tpu.memory_space<vmem>>, vector<1x1x256xf32>,
      %c0_16 = arith.constant 0 : index
      %c0_17 = arith.constant 0 : index
      %39 = vector.load %arg5[%c0_16, %c0_17] : memref<1x256xf32, #tpu.memory_space<vmem>>, vector<1x256xf32>
      %40 = vector.shape_cast %39 : vector<1x256xf32> to vector<1x1x256xf32>
      %41 = vector.broadcast %40 : vector<1x1x256xf32> to vector<2x32x256xf32>
      %42 = arith.subf %28, %41 : vector<2x32x256xf32>
      %c0_18 = arith.constant 0 : index
      %43 = memref.load %arg2[%c0_18] : memref<1xf32, #tpu.memory_space<smem>>
      %44 = vector.broadcast %43 : f32 to vector<2x32x256xf32>
      %45 = arith.mulf %42, %44 : vector<2x32x256xf32>
      %cst_19 = arith.constant dense<0xFF800000> : vector<2x32xf32>
      %46 = vector.multi_reduction <maximumf>, %45, %cst_19 [2] : vector<2x32x256xf32> to vector<2x32xf32>
      %47 = vector.shape_cast %46 : vector<2x32xf32> to vector<2x32x1xf32>
      %48 = vector.broadcast %47 : vector<2x32x1xf32> to vector<2x32x256xf32>
      %49 = arith.subf %45, %48 : vector<2x32x256xf32>
      %50 = math.exp %49 : vector<2x32x256xf32>
      %cst_20 = arith.constant dense<0.000000e+00> : vector<2x32xf32>
      %51 = vector.multi_reduction <add>, %50, %cst_20 [2] : vector<2x32x256xf32> to vector<2x32xf32>
      %52 = vector.shape_cast %51 : vector<2x32xf32> to vector<2x32x1xf32>
      %53 = vector.broadcast %52 : vector<2x32x1xf32> to vector<2x32x256xf32>
      %54 = arith.divf %50, %53 : vector<2x32x256xf32>
      %55 = vector.extract_strided_slice %54 {offsets = [0, 0, 0], sizes = [1, 32, 256], strides = [1, 1, 1]} : vector<2x32x256xf32> to vector<1x32x256xf32>
      %56 = vector.shape_cast %55 : vector<1x32x256xf32> to vector<32x256xf32>
      %c0_21 = arith.constant 0 : index
      %c0_22 = arith.constant 0 : index
      %c0_23 = arith.constant 0 : index
      %57 = vector.load %arg8[%c0_21, %c0_22, %c0_23] : memref<2x32x256xf32, #tpu.memory_space<vmem>>, vector<1x32x256xf32>
      %58 = vector.shape_cast %57 : vector<1x32x256xf32> to vector<32x256xf32>
      %59 = vector.shape_cast %56 : vector<32x256xf32> to vector<1x32x256xf32>
      tpu.vector_store %arg8[%c0_21, %c0_22, %c0_23], %59 {strides = array<i32>} : memref<2x32x256xf32, #tpu.memory_space<vmem>>, vector<1x32x256xf32>,
      %60 = vector.extract_strided_slice %54 {offsets = [1, 0, 0], sizes = [1, 32, 256], strides = [1, 1, 1]} : vector<2x32x256xf32> to vector<1x32x256xf32>
      %61 = vector.shape_cast %60 : vector<1x32x256xf32> to vector<32x256xf32>
      %c1 = arith.constant 1 : index
      %c0_24 = arith.constant 0 : index
      %c0_25 = arith.constant 0 : index
      %62 = vector.load %arg8[%c1, %c0_24, %c0_25] : memref<2x32x256xf32, #tpu.memory_space<vmem>>, vector<1x32x256xf32>
      %63 = vector.shape_cast %62 : vector<1x32x256xf32> to vector<32x256xf32>
      %64 = vector.shape_cast %61 : vector<32x256xf32> to vector<1x32x256xf32>
      tpu.vector_store %arg8[%c1, %c0_24, %c0_25], %64 {strides = array<i32>} : memref<2x32x256xf32, #tpu.memory_space<vmem>>, vector<1x32x256xf32>,
      %cst_26 = arith.constant 0.000000e+00 : f32
      %65 = vector.broadcast %cst_26 : f32 to vector<1x256xf32>
      %c0_27 = arith.constant 0 : index
      %c0_28 = arith.constant 0 : index
      %c0_29 = arith.constant 0 : index
      %66 = vector.load %arg6[%c0_27, %c0_28, %c0_29] : memref<1x1x256xf32, #tpu.memory_space<vmem>>, vector<1x1x256xf32>
      %67 = vector.shape_cast %66 : vector<1x1x256xf32> to vector<1x256xf32>
      %68 = vector.shape_cast %65 : vector<1x256xf32> to vector<1x1x256xf32>
      tpu.vector_store %arg6[%c0_27, %c0_28, %c0_29], %68 {strides = array<i32>} : memref<1x1x256xf32, #tpu.memory_space<vmem>>, vector<1x1x256xf32>,
    } else {
    }
    %c0 = arith.constant 0 : index
    %c0_1 = arith.constant 0 : index
    %c0_2 = arith.constant 0 : index
    %3 = vector.load %arg3[%c0, %c0_1, %c0_2] : memref<1x32x256xbf16, #tpu.memory_space<vmem>>, vector<1x32x256xbf16>
    %4 = vector.shape_cast %3 : vector<1x32x256xbf16> to vector<32x256xbf16>
    %5 = arith.extf %4 : vector<32x256xbf16> to vector<32x256xf32>
    %cst = arith.constant 1.000000e+01 : f32
    %6 = vector.broadcast %cst : f32 to vector<32x256xf32>
    %7 = arith.mulf %5, %6 : vector<32x256xf32>
    %cst_3 = arith.constant dense<0xFF800000> : vector<32xf32>
    %8 = vector.multi_reduction <maximumf>, %7, %cst_3 [1] : vector<32x256xf32> to vector<32xf32>
    %9 = vector.shape_cast %8 : vector<32xf32> to vector<32x1xf32>
    %10 = vector.broadcast %9 : vector<32x1xf32> to vector<32x256xf32>
    %11 = arith.subf %7, %10 : vector<32x256xf32>
    %12 = math.exp %11 : vector<32x256xf32>
    %cst_4 = arith.constant dense<0.000000e+00> : vector<32xf32>
    %13 = vector.multi_reduction <add>, %12, %cst_4 [1] : vector<32x256xf32> to vector<32xf32>
    %14 = vector.shape_cast %13 : vector<32xf32> to vector<32x1xf32>
    %15 = math.log %14 : vector<32x1xf32>
    %16 = vector.broadcast %15 : vector<32x1xf32> to vector<32x256xf32>
    %17 = arith.subf %11, %16 : vector<32x256xf32>
    %c0_i32_5 = arith.constant 0 : i32
    %18 = arith.cmpi eq, %arg1, %c0_i32_5 : i32
    %19 = arith.extui %18 : i1 to i32
    %c0_i32_6 = arith.constant 0 : i32
    %20 = arith.cmpi ne, %19, %c0_i32_6 : i32
    scf.if %20 {
      %c0_9 = arith.constant 0 : index
      %c0_10 = arith.constant 0 : index
      %c0_11 = arith.constant 0 : index
      %27 = vector.load %arg6[%c0_9, %c0_10, %c0_11] : memref<1x1x256xf32, #tpu.memory_space<vmem>>, vector<1x1x256xf32>
      %28 = vector.shape_cast %27 : vector<1x1x256xf32> to vector<1x256xf32>
      %c1 = arith.constant 1 : index
      %c0_12 = arith.constant 0 : index
      %c0_13 = arith.constant 0 : index
      %29 = vector.load %arg8[%c1, %c0_12, %c0_13] : memref<2x32x256xf32, #tpu.memory_space<vmem>>, vector<1x32x256xf32>
      %30 = vector.shape_cast %29 : vector<1x32x256xf32> to vector<32x256xf32>
      %31 = arith.mulf %30, %17 : vector<32x256xf32>
      %cst_14 = arith.constant dense<0.000000e+00> : vector<256xf32>
      %32 = vector.multi_reduction <add>, %31, %cst_14 [0] : vector<32x256xf32> to vector<256xf32>
      %33 = vector.shape_cast %32 : vector<256xf32> to vector<1x256xf32>
      %34 = arith.addf %28, %33 : vector<1x256xf32>
      %c0_15 = arith.constant 0 : index
      %c0_16 = arith.constant 0 : index
      %c0_17 = arith.constant 0 : index
      %35 = vector.load %arg6[%c0_15, %c0_16, %c0_17] : memref<1x1x256xf32, #tpu.memory_space<vmem>>, vector<1x1x256xf32>
      %36 = vector.shape_cast %35 : vector<1x1x256xf32> to vector<1x256xf32>
      %37 = vector.shape_cast %34 : vector<1x256xf32> to vector<1x1x256xf32>
      tpu.vector_store %arg6[%c0_15, %c0_16, %c0_17], %37 {strides = array<i32>} : memref<1x1x256xf32, #tpu.memory_space<vmem>>, vector<1x1x256xf32>,
    } else {
    }
    %c1_i32 = arith.constant 1 : i32
    %21 = arith.cmpi eq, %arg1, %c1_i32 : i32
    %22 = arith.extui %21 : i1 to i32
    %c0_i32_7 = arith.constant 0 : i32
    %23 = arith.cmpi ne, %22, %c0_i32_7 : i32
    scf.if %23 {
      %c0_9 = arith.constant 0 : index
      %c0_10 = arith.constant 0 : index
      %c0_11 = arith.constant 0 : index
      %27 = vector.load %arg6[%c0_9, %c0_10, %c0_11] : memref<1x1x256xf32, #tpu.memory_space<vmem>>, vector<1x1x256xf32>
      %28 = vector.shape_cast %27 : vector<1x1x256xf32> to vector<1x256xf32>
      %c0_12 = arith.constant 0 : index
      %c0_13 = arith.constant 0 : index
      %c0_14 = arith.constant 0 : index
      %29 = vector.load %arg8[%c0_12, %c0_13, %c0_14] : memref<2x32x256xf32, #tpu.memory_space<vmem>>, vector<1x32x256xf32>
      %30 = vector.shape_cast %29 : vector<1x32x256xf32> to vector<32x256xf32>
      %31 = arith.mulf %30, %17 : vector<32x256xf32>
      %cst_15 = arith.constant dense<0.000000e+00> : vector<256xf32>
      %32 = vector.multi_reduction <add>, %31, %cst_15 [0] : vector<32x256xf32> to vector<256xf32>
      %33 = vector.shape_cast %32 : vector<256xf32> to vector<1x256xf32>
      %34 = arith.addf %28, %33 : vector<1x256xf32>
      %c0_16 = arith.constant 0 : index
      %c0_17 = arith.constant 0 : index
      %c0_18 = arith.constant 0 : index
      %35 = vector.load %arg6[%c0_16, %c0_17, %c0_18] : memref<1x1x256xf32, #tpu.memory_space<vmem>>, vector<1x1x256xf32>
      %36 = vector.shape_cast %35 : vector<1x1x256xf32> to vector<1x256xf32>
      %37 = vector.shape_cast %34 : vector<1x256xf32> to vector<1x1x256xf32>
      tpu.vector_store %arg6[%c0_16, %c0_17, %c0_18], %37 {strides = array<i32>} : memref<1x1x256xf32, #tpu.memory_space<vmem>>, vector<1x1x256xf32>,
    } else {
    }
    %c2_i32 = arith.constant 2 : i32
    %24 = arith.cmpi sge, %arg1, %c2_i32 : i32
    %25 = arith.extui %24 : i1 to i32
    %c0_i32_8 = arith.constant 0 : i32
    %26 = arith.cmpi ne, %25, %c0_i32_8 : i32
    scf.if %26 {
      %c0_9 = arith.constant 0 : index
      %c0_10 = arith.constant 0 : index
      %c0_11 = arith.constant 0 : index
      %27 = vector.load %arg6[%c0_9, %c0_10, %c0_11] : memref<1x1x256xf32, #tpu.memory_space<vmem>>, vector<1x1x256xf32>
      %28 = vector.shape_cast %27 : vector<1x1x256xf32> to vector<1x256xf32>
      %c0_12 = arith.constant 0 : index
      %c0_13 = arith.constant 0 : index
      %c0_14 = arith.constant 0 : index
      %29 = vector.load %arg8[%c0_12, %c0_13, %c0_14] : memref<2x32x256xf32, #tpu.memory_space<vmem>>, vector<1x32x256xf32>
      %30 = vector.shape_cast %29 : vector<1x32x256xf32> to vector<32x256xf32>
      %c1 = arith.constant 1 : index
      %c0_15 = arith.constant 0 : index
      %c0_16 = arith.constant 0 : index
      %31 = vector.load %arg8[%c1, %c0_15, %c0_16] : memref<2x32x256xf32, #tpu.memory_space<vmem>>, vector<1x32x256xf32>
      %32 = vector.shape_cast %31 : vector<1x32x256xf32> to vector<32x256xf32>
      %33 = arith.addf %30, %32 : vector<32x256xf32>
      %34 = arith.mulf %33, %17 : vector<32x256xf32>
      %cst_17 = arith.constant dense<0.000000e+00> : vector<256xf32>
      %35 = vector.multi_reduction <add>, %34, %cst_17 [0] : vector<32x256xf32> to vector<256xf32>
      %36 = vector.shape_cast %35 : vector<256xf32> to vector<1x256xf32>
      %37 = arith.addf %28, %36 : vector<1x256xf32>
      %c0_18 = arith.constant 0 : index
      %c0_19 = arith.constant 0 : index
      %c0_20 = arith.constant 0 : index
      %38 = vector.load %arg6[%c0_18, %c0_19, %c0_20] : memref<1x1x256xf32, #tpu.memory_space<vmem>>, vector<1x1x256xf32>
      %39 = vector.shape_cast %38 : vector<1x1x256xf32> to vector<1x256xf32>
      %40 = vector.shape_cast %37 : vector<1x256xf32> to vector<1x1x256xf32>
      tpu.vector_store %arg6[%c0_18, %c0_19, %c0_20], %40 {strides = array<i32>} : memref<1x1x256xf32, #tpu.memory_space<vmem>>, vector<1x1x256xf32>,
    } else {
    }
    return
  }
  func.func @transform_0(%arg0: i32, %arg1: i32, %arg2: memref<1xf32, #tpu.memory_space<smem>>) -> (i32, i32, i32) {
    %c0_i32 = arith.constant 0 : i32
    %c0_i32_0 = arith.constant 0 : i32
    return %arg1, %arg0, %c0_i32 : i32, i32, i32
  }
  func.func @transform_1(%arg0: i32, %arg1: i32, %arg2: memref<1xf32, #tpu.memory_space<smem>>) -> (i32, i32, i32) {
    %c0_i32 = arith.constant 0 : i32
    %c0_i32_0 = arith.constant 0 : i32
    %c0_i32_1 = arith.constant 0 : i32
    return %c0_i32, %arg0, %c0_i32_0 : i32, i32, i32
  }
  func.func @transform_2(%arg0: i32, %arg1: i32, %arg2: memref<1xf32, #tpu.memory_space<smem>>) -> (i32, i32) {
    %c0_i32 = arith.constant 0 : i32
    %c0_i32_0 = arith.constant 0 : i32
    %c0_i32_1 = arith.constant 0 : i32
    return %c0_i32, %c0_i32_0 : i32, i32
  }
  func.func @transform_3(%arg0: i32, %arg1: i32, %arg2: memref<1xf32, #tpu.memory_space<smem>>) -> (i32, i32, i32) {
    %c0_i32 = arith.constant 0 : i32
    %c0_i32_0 = arith.constant 0 : i32
    %c0_i32_1 = arith.constant 0 : i32
    return %arg0, %c0_i32, %c0_i32_0 : i32, i32, i32
  }
  func.func @transform_4(%arg0: i32, %arg1: i32, %arg2: memref<1xf32, #tpu.memory_space<smem>>) -> (i32, i32, i32) {
    %c0_i32 = arith.constant 0 : i32
    %c0_i32_0 = arith.constant 0 : i32
    %c0_i32_1 = arith.constant 0 : i32
    return %arg0, %c0_i32, %c0_i32_0 : i32, i32, i32
  }
}

</mosaic_0001>

<bundles_post_ra>
// kernel: tpu_custom_call.1
= control target key start
LH: loop header
LB: loop body
LE: loop exit
PB: predicated region body
PF: predicated region fallthrough
CT: control target
= control target key end

     0   :  { %s1606_s0 = inlined_call_operand.<no memory space> [shape: f32[1], index: 0, kind: input, shape index: {}]   ;;  %s1607_s1 = inlined_call_operand.hbm [shape: bf16[4,32,256], index: 1, kind: input, shape index: {}]   ;;  %s1608_s2 = inlined_call_operand.hbm [shape: bf16[2,32,256], index: 2, kind: input, shape index: {}]   ;;  %s1609_s3 = inlined_call_operand.vmem [shape: f32[1,256], index: 3, kind: input, shape index: {}]   ;;  %s1610_s4 = inlined_call_operand.hbm [shape: f32[1,1,256], index: 4, kind: output, shape index: {0}]   ;;  %s1611_s5 = inlined_call_operand.hbm [shape: f32[1,1,256], index: 5, kind: output, shape index: {1}]  }
   0x1   :  { %11 = sst [smem:[#allocation4]] %s1606_s0 }
   0x2   :  { %12 = vsyncpa [#allocation6], 0 }
   0x3   :  { %14 = vsyncpa [#allocation6 + $0x1], 0 }
   0x4   :  { %15 = vsyncpa [#allocation9], 0 }
   0x5   :  { %16 = vsyncpa [#allocation7], 0 }
   0x6   :  { %17 = vsyncpa [#allocation12], 0  ;;  %s1312_s20 = smov 0   ;;  %s1314_s21 = smov 0  }
   0x7   :  { %s1316_s22 = smov 0   ;;  %s1318_s23 = smov 0  }
   0x8   :  { %s1320_s24 = smov 0   ;;  %s1322_s25 = smov 0  }
   0x9 LB: > { %s922_s0 = sadd.s32 4294967295, %s1266_s25   ;;  %p57_p0 = scmp.ne.s32.totalorder %s1250_s21, %s1246_s20  ;;  %s1266_s25 = sphi %s1322_s25, %s23_s25   ;;  %s1262_s24 = sphi %s1320_s24, %s1624_s24   ;;  %s1258_s23 = sphi %s1318_s23, %s1623_s23   ;;  %s1254_s22 = sphi %s1316_s22, %s1622_s22   ;;  %s1250_s21 = sphi %s1314_s21, %s1621_s21   ;;  %s1246_s20 = sphi %s1312_s20, %s1620_s20  }
   0xa   : > { %p1344_p1 = scmp.eq.s32.totalorder %s922_s0, 0  ;;  %p923_p2 = scmp.ge.s32.totalorder %s1266_s25, 1 }
   0xb   : > { %p167_p3 = scmp.lt.s32.totalorder %s1266_s25, 5  ;;  %s1268_s29 = smov [#allocation8]  }
   0xc   : > { %p1352_p4 = por %p1344_p1, %p57_p0  ;;  %s183_s30 = sshll.u32 %s1268_s29, 4  ;;  %s184_s30 = int_to_ptr.vmem [resolvable:$true] %s183_s30 }
   0xd   : > { %p1356_p5 = pnand %p923_p2, %p167_p3  ;;  %s32_s7 = sadd.s32 1, %s1262_s24 }
   0xe   : > { %s1113_s8 = scalar_lea.vmem %s184_s30, 1024  ;;  %p1121_p12 = scmp.lt.s32.totalorder %s184_s30, %s184_s30 }
   0xf   : > { %p957_p6 = pneg %p1356_p5  ;;  %p1114_p9 = scmp.ne.s32.totalorder %s184_s30, %s1113_s8 }
  0x10   : > { %p1122_p13 = scmp.lt.s32.totalorder %s1113_s8, %s1113_s8 }
  0x11   : > { %p1364_p7 = pnand %p957_p6, %p1344_p1 }
  0x12   : > { %p1123_p0 = por %p1122_p13, %p1121_p12 }
  0x13   : > { %p1104_p8 = pneg %p1364_p7 }
  0x15   : > { %p1116_p10 = pnand %p1114_p9, %p1104_p8 }
  0x17   : > { %p1117_p11 = pneg %p1116_p10 }
  0x19   : > { %p1124_p2 = pnand %p1123_p0, %p1117_p11 }
  0x1b   : > { %1127 = shalt.err (!%p1124_p2)
}
  0x1c   : > { %s1269_s9 = smov 128   ;;  %s1270_s10 = smov 8  }
  0x1d   : > { %960 = dma.hbm_to_vmem [thread:$0]  (!%p1364_p7), %s1608_s2, 1024, %s184_s30, [#allocation9], %s1269_s9, %s1269_s9, %s1270_s10  }
  0x1e   : > { %p33_p3 = scmp.ge.s32.totalorder %s32_s7, 4  ;;  %s44_s13 = sadd.s32 1, %s1254_s22 }
  0x1f   : > { %p51_p6 = scmp.ne.s32.totalorder %s1254_s22, %s1250_s21  ;;  %p52_p8 = scmp.eq.s32.totalorder %s1266_s25, 0 }
  0x20   : > { %s1626_s7 = smov (%p33_p3, %s32_s7), 0  ;;  %p966_p10 = scmp.lt.s32.totalorder %s1266_s25, 4 }
  0x21   : > { %p53_p9 = por %p52_p8, %p51_p6  ;;  %s39_s14 = ssub.s32 %s1262_s24, %s1626_s7 }
  0x22   : > { %s200_s15 = sand.u32 1, %s1254_s22   ;;  %p42_p11 = scmp.eq.s32.totalorder %s39_s14, 0 }
  0x23   : > { %s926_s16 = sshll.u32 %s200_s15, 5  ;;  %s942_s17 = sshll.u32 %s1262_s24, 9 }
  0x24   : > { %s1391_s18 = scalar_select %p42_p11, %s1254_s22, %s44_s13  }
  0x25   : > { %s213_s29 = scalar_lea.hbm %s1607_s1, %s942_s17  ;;  %s204_s30 = scalar_lea.vmem [#allocation5], %s926_s16 }
  0x26   : > { %s214_s6 = sshll.u32 %s204_s30, 4  ;;  %p1396_p7 = pnand %p966_p10, %p53_p9  ;;  %s215_s6 = int_to_ptr.vmem [resolvable:$true] %s214_s6 }
  0x27   : > { %s201_s11 = scalar_lea.sflag [#allocation6], %s200_s15  ;;  %s1141_s12 = scalar_lea.vmem %s215_s6, 512 }
  0x28   : > { %p1130_p12 = pneg %p1396_p7  ;;  %p1142_p13 = scmp.ne.s32.totalorder %s215_s6, %s1141_s12 }
  0x29   : > { %s1271_s13 = smov [#allocation5]  }
  0x2a   : > { %p1144_p0 = pnand %p1142_p13, %p1130_p12  ;;  %s1146_s14 = sshll.u32 %s1271_s13, 4  ;;  %s1147_s14 = int_to_ptr.vmem [resolvable:$false] %s1146_s14 }
  0x2b   : > { %s1148_s19 = scalar_lea.vmem %s1147_s14, 1024  ;;  %p1149_p3 = scmp.lt.s32.totalorder %s215_s6, %s1147_s14 }
  0x2c   : > { %p1145_p2 = pneg %p1144_p0  ;;  %p1150_p6 = scmp.lt.s32.totalorder %s1148_s19, %s1141_s12 }
  0x2e   : > { %p1151_p8 = por %p1150_p6, %p1149_p3 }
  0x30   : > { %p1152_p9 = pnand %p1151_p8, %p1145_p2 }
  0x32   : > { %1155 = shalt.err (!%p1152_p9)
}
  0x33   : > { %964 = dma.hbm_to_vmem [thread:$0]  (!%p1396_p7), %s213_s29, 512, %s215_s6, %s201_s11, %s1269_s9, %s1269_s9, %s1270_s10  }
  0x34   : > { %226 = sbr.rel (%p1356_p5) target bundleno = 879 (0x36f), region = 32  ;;  %s228_s15 = sand.u32 (!%p1356_p5), 1, %s1250_s21  }
  0x35   : > { %s930_s16 = sshll.u32 (!%p1356_p5), %s228_s15, 5  ;;  %s229_s17 = scalar_lea.sflag (!%p1356_p5), [#allocation6], %s228_s15 }
  0x36   : > { %s1410_s20 = scalar_lea.vmem (!%p1356_p5), [#allocation5], %s930_s16 }
  0x39   : > { %1229 = dma.done.wait (%p1352_p4), %s229_s17, 512  }
  0x3a   : > { %1231 = vsyncadd (%p1352_p4), %s229_s17, 4294966784 }
  0x3b   : > { %1233 = dma.done.wait (%p1344_p1), [#allocation9], 1024  }
  0x3c   : > { %1235 = vsyncadd (%p1344_p1), [#allocation9], 4294966272  ;;  %p932_p5 = scmp.ne.s32.totalorder %s1258_s23, 0 }
  0x3d   : > { %s1423_s28 = sld [smem:[#allocation4]] (!%p932_p5) }
  0x3e   : > { %261 = sbr.rel (%p932_p5) target bundleno = 411 (0x19b), region = 44 }
  0x43   : > { %v262_v0 = vld [vmem:[#allocation8] sm:$0xff]  ;;  %v318_v1 = vlaneseq  ;;  %v264_v2 = vld [vmem:[#allocation8 + $0x10] sm:$0xff]  ;;  %v263_v7 = vld [vmem:[#allocation8 + $0x8] sm:$0xff]  ;;  %v364_v32 = vstv %s1423_s28 }
  0x44   : > { %v270_v3 = vunpack.c.l.bf16 %v262_v0  ;;  %v271_v4 = vunpack.c.h.bf16 %v262_v0  ;;  %v274_v5 = vunpack.c.l.bf16 %v264_v2  ;;  %v275_v6 = vunpack.c.h.bf16 %v264_v2  ;;  %v1425_v8 = vld [vmem:[#allocation8 + $0x18] sm:$0xff]  ;;  %v266_v9 = vld [vmem:[#allocation8 + $0x20] sm:$0xff]  ;;  %v267_v14 = vld [vmem:[#allocation8 + $0x28] sm:$0xff] }
  0x45   : > { %v1428_v10 = vshrl.u32 %v318_v1, 7  ;;  %v272_v11 = vunpack.c.l.bf16 %v263_v7  ;;  %v273_v12 = vunpack.c.h.bf16 %v263_v7  ;;  %v276_v13 = vunpack.c.l.bf16 %v1425_v8  ;;  %v268_v15 = vld [vmem:[#allocation8 + $0x30] sm:$0xff]  ;;  %v335_v16 = vld [vmem:[%s1609_s3] sm:$0x3]  ;;  %v269_v25 = vld [vmem:[#allocation8 + $0x38] sm:$0xff] }
  0x46   : > { %v277_v17 = vunpack.c.h.bf16 %v1425_v8  ;;  %v278_v18 = vunpack.c.l.bf16 %v266_v9  ;;  %v279_v19 = vunpack.c.h.bf16 %v266_v9  ;;  %v280_v20 = vunpack.c.l.bf16 %v267_v14 }
  0x47   : > { %v339_v21 = vsub.s32 0, %v1428_v10  ;;  %v343_v22 = vsub.s32 1, %v1428_v10  ;;  %v281_v23 = vunpack.c.h.bf16 %v267_v14  ;;  %v282_v24 = vunpack.c.l.bf16 %v268_v15 }
  0x48   : > { %v287_v26 = vadd.f32 %v279_v19, %v271_v4  ;;  %v286_v27 = vadd.f32 %v278_v18, %v270_v3  ;;  %v288_v28 = vadd.f32 %v280_v20, %v272_v11  ;;  %v283_v29 = vunpack.c.h.bf16 %v268_v15 }
  0x49   : > { %v340_v30 = vrot.slane %v335_v16, %v339_v21  ;;  %v344_v31 = vrot.slane %v335_v16, %v343_v22  ;;  %v289_v33 = vadd.f32 %v281_v23, %v273_v12  ;;  %v290_v35 = vadd.f32 %v282_v24, %v274_v5 }
  0x4a   : > { %v294_v34 = vadd.f32 %v288_v28, %v286_v27  ;;  %v291_v36 = vadd.f32 %v283_v29, %v275_v6  ;;  %v284_v37 = vunpack.c.l.bf16 %v269_v25  ;;  %v285_v2 = vunpack.c.h.bf16 %v269_v25 }
  0x4b   : > { %v347_v38 = vsub.f32 %v270_v3, %v340_v30  ;;  %v348_v39 = vsub.f32 %v271_v4, %v344_v31  ;;  %v351_v40 = vsub.f32 %v274_v5, %v340_v30  ;;  %v352_v41 = vsub.f32 %v275_v6, %v344_v31 }
  0x4c   : > { %v349_v42 = vsub.f32 %v272_v11, %v340_v30  ;;  %v350_v43 = vsub.f32 %v273_v12, %v344_v31  ;;  %v353_v44 = vsub.f32 %v276_v13, %v340_v30  ;;  %v354_v45 = vsub.f32 %v277_v17, %v344_v31 }
  0x4d   : > { %v1438_v46 = vmul.f32 %v364_v32, %v347_v38  ;;  %v1440_v47 = vmul.f32 %v364_v32, %v348_v39  ;;  %v1442_v48 = vmul.f32 %v364_v32, %v351_v40  ;;  %v1444_v49 = vmul.f32 %v364_v32, %v352_v41 }
  0x4e   : > { %v1446_v50 = vmul.f32 %v364_v32, %v349_v42  ;;  %v1448_v51 = vmul.f32 %v364_v32, %v350_v43  ;;  %v1450_v52 = vmul.f32 %v364_v32, %v353_v44  ;;  %v1452_v53 = vmul.f32 %v364_v32, %v354_v45 }
  0x4f   : > { %v381_v54 = vmax.f32 %v1438_v46, %v1440_v47  ;;  %v387_v55 = vmax.f32 %v1442_v48, %v1444_v49  ;;  %v355_v56 = vsub.f32 %v278_v18, %v340_v30  ;;  %v356_v57 = vsub.f32 %v279_v19, %v344_v31 }
  0x50   : > { %v384_v58 = vmax.f32 %v1446_v50, %v1448_v51  ;;  %v390_v59 = vmax.f32 %v1450_v52, %v1452_v53  ;;  %v357_v60 = vsub.f32 %v280_v20, %v340_v30  ;;  %v358_v61 = vsub.f32 %v281_v23, %v344_v31 }
  0x51   : > { %382 = vmax.xlane.f32.xlu0 %v381_v54  ;;  %388 = vmax.xlane.f32.xlu1 %v387_v55  ;;  %v1462_v62 = vmul.f32 %v364_v32, %v355_v56  ;;  %v1464_v63 = vmul.f32 %v364_v32, %v356_v57  ;;  %v303_v0 = vadd.f32 %v289_v33, %v287_v26  ;;  %vm1479_vm0 = vcmp.lt.s32.totalorder %v318_v1, 256 }
  0x52   : > { %v1466_v3 = vmul.f32 %v364_v32, %v357_v60  ;;  %v1468_v4 = vmul.f32 %v364_v32, %v358_v61  ;;  %v359_v5 = vsub.f32 %v282_v24, %v340_v30  ;;  %v360_v6 = vsub.f32 %v283_v29, %v344_v31 }
  0x53   : > { %v304_v7 = vadd.f32 %v303_v0, %v291_v36  ;;  %v295_v8 = vadd.f32 %v294_v34, %v290_v35  ;;  %v292_v9 = vadd.f32 %v284_v37, %v276_v13  ;;  %v393_v11 = vmax.f32 %v1462_v62, %v1464_v63 }
  0x54   : > { %v396_v12 = vmax.f32 %v1466_v3, %v1468_v4  ;;  %v1474_v14 = vmul.f32 %v364_v32, %v359_v5  ;;  %v293_v15 = vadd.f32 %v285_v2, %v277_v17  ;;  %v1476_v16 = vmul.f32 %v364_v32, %v360_v6 }
  0x55   : > { %385 = vmax.xlane.f32.xlu0 %v384_v58  ;;  %391 = vmax.xlane.f32.xlu1 %v390_v59  ;;  %v361_v19 = vsub.f32 %v284_v37, %v340_v30  ;;  %v362_v13 = vsub.f32 %v285_v2, %v344_v31  ;;  %v296_v20 = vadd.f32 %v295_v8, %v292_v9  ;;  %v1272_v23 = vmov 0.0  }
  0x56   : > { %518 = vst.msk [vmem:[#allocation10] sm:$0x3] %vm1479_vm0, %v1272_v23  ;;  %v305_v17 = vadd.f32 %v304_v7, %v293_v15  ;;  %v399_v1 = vmax.f32 %v1474_v14, %v1476_v16  ;;  %v1273_v28 = vmov 1966171168  }
  0x57   : > { %v1483_v21 = vmul.f32 %v364_v32, %v361_v19  ;;  %v1485_v22 = vmul.f32 %v364_v32, %v362_v13  ;;  %v297_v24 = vrot.slane %v296_v20, 4  ;;  %v316_v29 = vunpack.c.l.s4 %v1273_v28 }
  0x58   : > { %v306_v26 = vrot.slane %v305_v17, 4 }
  0x59   : > { %394 = vmax.xlane.f32.xlu0 %v393_v11  ;;  %397 = vmax.xlane.f32.xlu1 %v396_v12  ;;  %v402_v25 = vmax.f32 %v1483_v21, %v1485_v22  ;;  %v298_v27 = vadd.f32 %v297_v24, %v296_v20  ;;  %v317_v34 = vunpack.c.0.s8 %v316_v29 }
  0x5a   : > { %v307_v30 = vadd.f32 %v306_v26, %v305_v17 }
  0x5b   : > { %v299_v31 = vrot.slane %v298_v27, 2  ;;  %v320_v39 = vsub.s32 %v317_v34, %v1428_v10 }
  0x5c   : > { %v308_v32 = vrot.slane %v307_v30, 2 }
  0x5d   : > { %400 = vmax.xlane.f32.xlu0 %v399_v1  ;;  %403 = vmax.xlane.f32.xlu1 %v402_v25  ;;  %v300_v33 = vadd.f32 %v299_v31, %v298_v27 }
  0x5e   : > { %v309_v35 = vadd.f32 %v308_v32, %v307_v30 }
  0x5f   : > { %v301_v36 = vrot.slane %v300_v33, 1 }
  0x60   : > { %v310_v37 = vrot.slane %v309_v35, 1 }
  0x61   : > { %v302_v38 = vadd.f32 %v301_v36, %v300_v33 }
  0x62   : > { %v311_v40 = vadd.f32 %v310_v37, %v309_v35 }
  0x64   : > { %v314_v41 = vcombine.low %v302_v38, %v311_v40 }
  0x66   : > { %v321_v42 = vrot.slane %v314_v41, %v320_v39 }
  0x68   : > { %v328_v43 = vrot.slane %v321_v42, %v320_v39 }
  0x6a   : > { %334 = vst.msk [vmem:[#allocation11] sm:$0x3] %vm1479_vm0, %v328_v43 }
  0xda   : > { %v383_v44 = vpop.xlane.xlu0 %382  ;;  %v389_v45 = vpop.xlane.xlu1 %388 }
  0xdb   : > { %v405_v54 = vsub.f32 %v1438_v46, %v383_v44  ;;  %v406_v55 = vsub.f32 %v1440_v47, %v383_v44  ;;  %v409_v56 = vsub.f32 %v1442_v48, %v389_v45  ;;  %v410_v57 = vsub.f32 %v1444_v49, %v389_v45 }
  0xdd   : > { %v421_v58 = vmul.f32 1.442695, %v405_v54  ;;  %v423_v59 = vmul.f32 1.442695, %v406_v55  ;;  %v429_v10 = vmul.f32 1.442695, %v409_v56 }
  0xde   : > { %v431_v60 = vmul.f32 1.442695, %v410_v57  ;;  %v386_v61 = vpop.xlane.xlu0 %385  ;;  %v392_v0 = vpop.xlane.xlu1 %391 }
  0xdf   : > { %1030 = vpow2.f32 %v421_v58  ;;  %v407_v2 = vsub.f32 %v1446_v50, %v386_v61  ;;  %v408_v5 = vsub.f32 %v1448_v51, %v386_v61  ;;  %v411_v6 = vsub.f32 %v1450_v52, %v392_v0 }
  0xe0   : > { %1032 = vpow2.f32 %v423_v59  ;;  %v412_v46 = vsub.f32 %v1452_v53, %v392_v0 }
  0xe1   : > { %1034 = vpow2.f32 %v429_v10  ;;  %v425_v47 = vmul.f32 1.442695, %v407_v2  ;;  %v427_v48 = vmul.f32 1.442695, %v408_v5  ;;  %v433_v49 = vmul.f32 1.442695, %v411_v6 }
  0xe2   : > { %1036 = vpow2.f32 %v431_v60  ;;  %v435_v7 = vmul.f32 1.442695, %v412_v46  ;;  %v395_v8 = vpop.xlane.xlu0 %394  ;;  %v398_v9 = vpop.xlane.xlu1 %397 }
  0xe3   : > { %1038 = vpow2.f32 %v425_v47  ;;  %v413_v11 = vsub.f32 %v1462_v62, %v395_v8  ;;  %v414_v50 = vsub.f32 %v1464_v63, %v395_v8  ;;  %v415_v51 = vsub.f32 %v1466_v3, %v398_v9 }
  0xe4   : > { %1040 = vpow2.f32 %v427_v48  ;;  %v416_v52 = vsub.f32 %v1468_v4, %v398_v9 }
  0xe5   : > { %1042 = vpow2.f32 %v433_v49  ;;  %v437_v53 = vmul.f32 1.442695, %v413_v11  ;;  %v439_v12 = vmul.f32 1.442695, %v414_v50  ;;  %v441_v15 = vmul.f32 1.442695, %v415_v51 }
  0xe6   : > { %1044 = vpow2.f32 %v435_v7  ;;  %v443_v18 = vmul.f32 1.442695, %v416_v52  ;;  %v401_v19 = vpop.xlane.xlu0 %400  ;;  %v404_v13 = vpop.xlane.xlu1 %403 }
  0xe7   : > { %1046 = vpow2.f32 %v437_v53  ;;  %v417_v20 = vsub.f32 %v1474_v14, %v401_v19  ;;  %v418_v62 = vsub.f32 %v1476_v16, %v401_v19  ;;  %v419_v63 = vsub.f32 %v1483_v21, %v404_v13 }
  0xe8   : > { %1048 = vpow2.f32 %v439_v12  ;;  %v420_v3 = vsub.f32 %v1485_v22, %v404_v13 }
  0xe9   : > { %1050 = vpow2.f32 %v441_v15  ;;  %v445_v4 = vmul.f32 1.442695, %v417_v20  ;;  %v447_v23 = vmul.f32 1.442695, %v418_v62  ;;  %v449_v17 = vmul.f32 1.442695, %v419_v63 }
  0xea   : > { %1052 = vpow2.f32 %v443_v18  ;;  %v451_v24 = vmul.f32 1.442695, %v420_v3 }
  0xeb   : > { %1054 = vpow2.f32 %v445_v4 }
  0xec   : > { %v1031_v1 = vpop.eup %1030  ;;  %1056 = vpow2.f32 %v447_v23 }
  0xed   : > { %v1033_v25 = vpop.eup %1032  ;;  %1058 = vpow2.f32 %v449_v17 }
  0xee   : > { %v1035_v26 = vpop.eup %1034  ;;  %1060 = vpow2.f32 %v451_v24  ;;  %v453_v14 = vadd.f32 %v1033_v25, %v1031_v1 }
  0xef   : > { %v1037_v16 = vpop.eup %1036 }
  0xf0   : > { %v1039_v27 = vpop.eup %1038  ;;  %454 = vadd.xlane.f32.xlu0 %v453_v14  ;;  %v459_v21 = vadd.f32 %v1037_v16, %v1035_v26 }
  0xf1   : > { %v1041_v28 = vpop.eup %1040 }
  0xf2   : > { %v1043_v22 = vpop.eup %1042  ;;  %v456_v29 = vadd.f32 %v1041_v28, %v1039_v27 }
  0xf3   : > { %v1045_v30 = vpop.eup %1044 }
  0xf4   : > { %v1047_v31 = vpop.eup %1046  ;;  %460 = vadd.xlane.f32.xlu0 %v459_v21  ;;  %457 = vadd.xlane.f32.xlu1 %v456_v29  ;;  %v462_v32 = vadd.f32 %v1045_v30, %v1043_v22 }
  0xf5   : > { %v1049_v33 = vpop.eup %1048 }
  0xf6   : > { %v1051_v34 = vpop.eup %1050  ;;  %v465_v35 = vadd.f32 %v1049_v33, %v1047_v31 }
  0xf7   : > { %v1053_v36 = vpop.eup %1052 }
  0xf8   : > { %v1055_v37 = vpop.eup %1054  ;;  %463 = vadd.xlane.f32.xlu1 %v462_v32  ;;  %466 = vadd.xlane.f32.xlu0 %v465_v35  ;;  %v468_v38 = vadd.f32 %v1053_v36, %v1051_v34 }
  0xf9   : > { %v1057_v39 = vpop.eup %1056 }
  0xfa   : > { %v1059_v40 = vpop.eup %1058  ;;  %v471_v41 = vadd.f32 %v1057_v39, %v1055_v37 }
  0xfb   : > { %v1061_v42 = vpop.eup %1060 }
  0xfc   : > { %469 = vadd.xlane.f32.xlu1 %v468_v38  ;;  %472 = vadd.xlane.f32.xlu0 %v471_v41  ;;  %v474_v43 = vadd.f32 %v1061_v42, %v1059_v40 }
 0x100   : > { %475 = vadd.xlane.f32.xlu1 %v474_v43 }
 0x179   : > { %v455_v44 = vpop.xlane.xlu0 %454 }
 0x17a   : > { %1062 = vrcp.f32 %v455_v44 }
 0x17d   : > { %v458_v45 = vpop.xlane.xlu1 %457  ;;  %v461_v54 = vpop.xlane.xlu0 %460 }
 0x17e   : > { %1064 = vrcp.f32 %v458_v45 }
 0x17f   : > { %1066 = vrcp.f32 %v461_v54 }
 0x181   : > { %v464_v55 = vpop.xlane.xlu1 %463  ;;  %v467_v56 = vpop.xlane.xlu0 %466 }
 0x182   : > { %1068 = vrcp.f32 %v464_v55 }
 0x183   : > { %1070 = vrcp.f32 %v467_v56 }
 0x185   : > { %v470_v57 = vpop.xlane.xlu1 %469  ;;  %v473_v58 = vpop.xlane.xlu0 %472 }
 0x186   : > { %1072 = vrcp.f32 %v470_v57 }
 0x187   : > { %v1063_v59 = vpop.eup %1062  ;;  %1074 = vrcp.f32 %v473_v58 }
 0x188   : > { %v478_v10 = vmul.f32 %v1063_v59, %v1031_v1  ;;  %v479_v60 = vmul.f32 %v1063_v59, %v1033_v25 }
 0x189   : > { %v476_v61 = vpop.xlane.xlu1 %475 }
 0x18a   : > { %501 = vst [vmem:[#allocation2 + $0x30] sm:$0xff] %v478_v10  ;;  %502 = vst [vmem:[#allocation2] sm:$0xff] %v479_v60  ;;  %1076 = vrcp.f32 %v476_v61 }
 0x18b   : > { %v1065_v0 = vpop.eup %1064 }
 0x18c   : > { %v1067_v2 = vpop.eup %1066  ;;  %v481_v5 = vmul.f32 %v1065_v0, %v1039_v27  ;;  %v482_v6 = vmul.f32 %v1065_v0, %v1041_v28 }
 0x18d   : > { %v484_v46 = vmul.f32 %v1067_v2, %v1035_v26  ;;  %v485_v47 = vmul.f32 %v1067_v2, %v1037_v16 }
 0x18e   : > { %503 = vst [vmem:[#allocation2 + $0x58] sm:$0xff] %v481_v5  ;;  %504 = vst [vmem:[#allocation2 + $0x18] sm:$0xff] %v482_v6 }
 0x18f   : > { %v1069_v48 = vpop.eup %1068  ;;  %505 = vst [vmem:[#allocation2 + $0x50] sm:$0xff] %v484_v46  ;;  %506 = vst [vmem:[#allocation2 + $0x68] sm:$0xff] %v485_v47 }
 0x190   : > { %v1071_v49 = vpop.eup %1070  ;;  %v487_v7 = vmul.f32 %v1069_v48, %v1043_v22  ;;  %v488_v8 = vmul.f32 %v1069_v48, %v1045_v30 }
 0x191   : > { %v490_v9 = vmul.f32 %v1071_v49, %v1047_v31  ;;  %v491_v11 = vmul.f32 %v1071_v49, %v1049_v33 }
 0x192   : > { %507 = vst [vmem:[#allocation2 + $0x8] sm:$0xff] %v487_v7  ;;  %508 = vst [vmem:[#allocation2 + $0x48] sm:$0xff] %v488_v8 }
 0x193   : > { %v1073_v50 = vpop.eup %1072  ;;  %510 = vst [vmem:[#allocation2 + $0x40] sm:$0xff] %v490_v9  ;;  %511 = vst [vmem:[#allocation2 + $0x20] sm:$0xff] %v491_v11 }
 0x194   : > { %v1075_v51 = vpop.eup %1074  ;;  %v493_v52 = vmul.f32 %v1073_v50, %v1051_v34  ;;  %v494_v53 = vmul.f32 %v1073_v50, %v1053_v36 }
 0x195   : > { %v496_v12 = vmul.f32 %v1075_v51, %v1055_v37  ;;  %v497_v15 = vmul.f32 %v1075_v51, %v1057_v39 }
 0x196   : > { %512 = vst [vmem:[#allocation2 + $0x10] sm:$0xff] %v493_v52  ;;  %513 = vst [vmem:[#allocation2 + $0x38] sm:$0xff] %v494_v53 }
 0x197   : > { %v1077_v18 = vpop.eup %1076  ;;  %514 = vst [vmem:[#allocation2 + $0x60] sm:$0xff] %v496_v12  ;;  %515 = vst [vmem:[#allocation2 + $0x70] sm:$0xff] %v497_v15 }
 0x198   : > { %v499_v19 = vmul.f32 %v1077_v18, %v1059_v40  ;;  %v500_v13 = vmul.f32 %v1077_v18, %v1061_v42 }
 0x19a   : > { %516 = vst [vmem:[#allocation2 + $0x78] sm:$0xff] %v499_v19  ;;  %517 = vst [vmem:[#allocation2 + $0x28] sm:$0xff] %v500_v13 }
 0x19b PF: > { %v519_v20 = vld [vmem:[%s1410_s20] sm:$0xff]  ;;  %v521_v62 = vld [vmem:[%s1410_s20 + $0x10] sm:$0xff]  ;;  %v520_v63 = vld [vmem:[%s1410_s20 + $0x8] sm:$0xff] }
 0x19c   : > { %v523_v3 = vunpack.c.l.bf16 %v519_v20  ;;  %v524_v4 = vunpack.c.h.bf16 %v519_v20  ;;  %v527_v23 = vunpack.c.l.bf16 %v521_v62  ;;  %v528_v17 = vunpack.c.h.bf16 %v521_v62  ;;  %v522_v24 = vld [vmem:[%s1410_s20 + $0x18] sm:$0xff] }
 0x19d   : > { %v525_v1 = vunpack.c.l.bf16 %v520_v63  ;;  %v526_v25 = vunpack.c.h.bf16 %v520_v63  ;;  %v529_v26 = vunpack.c.l.bf16 %v522_v24  ;;  %v530_v14 = vunpack.c.h.bf16 %v522_v24 }
 0x19e   : > { %v531_v16 = vmul.f32 10.0, %v523_v3  ;;  %v532_v27 = vmul.f32 10.0, %v524_v4  ;;  %v535_v21 = vmul.f32 10.0, %v527_v23  ;;  %v536_v28 = vmul.f32 10.0, %v528_v17 }
 0x19f   : > { %v533_v22 = vmul.f32 10.0, %v525_v1  ;;  %v534_v29 = vmul.f32 10.0, %v526_v25  ;;  %v537_v30 = vmul.f32 10.0, %v529_v26  ;;  %v538_v31 = vmul.f32 10.0, %v530_v14 }
 0x1a0   : > { %v539_v32 = vmax.f32 %v531_v16, %v532_v27  ;;  %v545_v33 = vmax.f32 %v535_v21, %v536_v28 }
 0x1a1   : > { %v542_v34 = vmax.f32 %v533_v22, %v534_v29  ;;  %v548_v35 = vmax.f32 %v537_v30, %v538_v31 }
 0x1a2   : > { %540 = vmax.xlane.f32.xlu0 %v539_v32  ;;  %546 = vmax.xlane.f32.xlu1 %v545_v33 }
 0x1a6   : > { %543 = vmax.xlane.f32.xlu0 %v542_v34  ;;  %549 = vmax.xlane.f32.xlu1 %v548_v35 }
 0x22b   : > { %v541_v36 = vpop.xlane.xlu0 %540  ;;  %v547_v37 = vpop.xlane.xlu1 %546 }
 0x22c   : > { %v551_v38 = vsub.f32 %v531_v16, %v541_v36  ;;  %v552_v39 = vsub.f32 %v532_v27, %v541_v36  ;;  %v555_v40 = vsub.f32 %v535_v21, %v547_v37  ;;  %v556_v41 = vsub.f32 %v536_v28, %v547_v37 }
 0x22e   : > { %v559_v42 = vmul.f32 1.442695, %v551_v38  ;;  %v561_v43 = vmul.f32 1.442695, %v552_v39  ;;  %v567_v44 = vmul.f32 1.442695, %v555_v40 }
 0x22f   : > { %v569_v45 = vmul.f32 1.442695, %v556_v41  ;;  %v544_v54 = vpop.xlane.xlu0 %543  ;;  %v550_v55 = vpop.xlane.xlu1 %549 }
 0x230   : > { %1078 = vpow2.f32 %v559_v42  ;;  %v553_v56 = vsub.f32 %v533_v22, %v544_v54  ;;  %v554_v57 = vsub.f32 %v534_v29, %v544_v54  ;;  %v557_v58 = vsub.f32 %v537_v30, %v550_v55 }
 0x231   : > { %1080 = vpow2.f32 %v561_v43  ;;  %v558_v59 = vsub.f32 %v538_v31, %v550_v55 }
 0x232   : > { %1082 = vpow2.f32 %v567_v44  ;;  %v563_v10 = vmul.f32 1.442695, %v553_v56  ;;  %v565_v60 = vmul.f32 1.442695, %v554_v57  ;;  %v571_v61 = vmul.f32 1.442695, %v557_v58 }
 0x233   : > { %1084 = vpow2.f32 %v569_v45  ;;  %v573_v0 = vmul.f32 1.442695, %v558_v59 }
 0x234   : > { %1086 = vpow2.f32 %v563_v10 }
 0x235   : > { %1088 = vpow2.f32 %v565_v60 }
 0x236   : > { %1090 = vpow2.f32 %v571_v61 }
 0x237   : > { %1092 = vpow2.f32 %v573_v0 }
 0x23d   : > { %v1079_v2 = vpop.eup %1078 }
 0x23e   : > { %v1081_v5 = vpop.eup %1080 }
 0x23f   : > { %v1083_v6 = vpop.eup %1082  ;;  %v575_v46 = vadd.f32 %v1081_v5, %v1079_v2 }
 0x240   : > { %v1085_v47 = vpop.eup %1084 }
 0x241   : > { %v1087_v48 = vpop.eup %1086  ;;  %576 = vadd.xlane.f32.xlu0 %v575_v46  ;;  %v581_v49 = vadd.f32 %v1085_v47, %v1083_v6 }
 0x242   : > { %v1089_v7 = vpop.eup %1088 }
 0x243   : > { %v1091_v8 = vpop.eup %1090  ;;  %v578_v9 = vadd.f32 %v1089_v7, %v1087_v48 }
 0x244   : > { %v1093_v11 = vpop.eup %1092 }
 0x245   : > { %582 = vadd.xlane.f32.xlu0 %v581_v49  ;;  %579 = vadd.xlane.f32.xlu1 %v578_v9  ;;  %v584_v50 = vadd.f32 %v1093_v11, %v1091_v8 }
 0x249   : > { %585 = vadd.xlane.f32.xlu1 %v584_v50 }
 0x2ca   : > { %v577_v51 = vpop.xlane.xlu0 %576 }
 0x2cb   : > { %1094 = vlog2.f32 %v577_v51 }
 0x2ce   : > { %v580_v52 = vpop.xlane.xlu1 %579  ;;  %v583_v53 = vpop.xlane.xlu0 %582 }
 0x2cf   : > { %1096 = vlog2.f32 %v580_v52 }
 0x2d0   : > { %1098 = vlog2.f32 %v583_v53 }
 0x2d2   : > { %v586_v12 = vpop.xlane.xlu1 %585 }
 0x2d3   : > { %1100 = vlog2.f32 %v586_v12 }
 0x2d8   : > { %v1095_v15 = vpop.eup %1094 }
 0x2d9   : > { %v588_v18 = vmul.f32 0.6931472, %v1095_v15 }
 0x2db   : > { %v1516_v19 = vsub.f32 %v551_v38, %v588_v18  ;;  %v1518_v13 = vsub.f32 %v552_v39, %v588_v18 }
 0x2dc   : > { %v1097_v20 = vpop.eup %1096 }
 0x2dd   : > { %v1099_v62 = vpop.eup %1098  ;;  %v590_v63 = vmul.f32 0.6931472, %v1097_v20 }
 0x2de   : > { %v592_v3 = vmul.f32 0.6931472, %v1099_v62 }
 0x2df   : > { %v1520_v4 = vsub.f32 %v553_v56, %v590_v63  ;;  %v1522_v23 = vsub.f32 %v554_v57, %v590_v63  ;;  %605 = sbr.rel (%p932_p5) target bundleno = 771 (0x303), region = 48 }
 0x2e0   : > { %v1101_v17 = vpop.eup %1100  ;;  %v1524_v24 = vsub.f32 %v555_v40, %v592_v3  ;;  %v1526_v1 = vsub.f32 %v556_v41, %v592_v3 }
 0x2e1   : > { %v594_v25 = vmul.f32 0.6931472, %v1101_v17 }
 0x2e3   : > { %v1528_v26 = vsub.f32 %v557_v58, %v594_v25  ;;  %v1530_v14 = vsub.f32 %v558_v59, %v594_v25 }
 0x2e4   : > { %v608_v16 = vld [vmem:[#allocation2 + $0x40] sm:$0xff]  ;;  %v610_v21 = vld [vmem:[#allocation2 + $0x10] sm:$0xff]  ;;  %v611_v28 = vld [vmem:[#allocation2 + $0x38] sm:$0xff]  ;;  %v1274_v58 = vmov 1966171168   ;;  %v648_v10 = vlaneseq }
 0x2e5   : > { %v609_v27 = vld [vmem:[#allocation2 + $0x20] sm:$0xff]  ;;  %v616_v29 = vmul.f32 %v608_v16, %v1516_v19  ;;  %v613_v31 = vld [vmem:[#allocation2 + $0x70] sm:$0xff]  ;;  %v614_v32 = vld [vmem:[#allocation2 + $0x78] sm:$0xff]  ;;  %v618_v34 = vmul.f32 %v610_v21, %v1520_v4  ;;  %v619_v35 = vmul.f32 %v611_v28, %v1522_v23  ;;  %v646_v59 = vunpack.c.l.s4 %v1274_v58 }
 0x2e6   : > { %v612_v22 = vld [vmem:[#allocation2 + $0x60] sm:$0xff]  ;;  %v617_v30 = vmul.f32 %v609_v27, %v1518_v13  ;;  %v615_v33 = vld [vmem:[#allocation2 + $0x28] sm:$0xff]  ;;  %v621_v37 = vmul.f32 %v613_v31, %v1526_v1  ;;  %v622_v38 = vmul.f32 %v614_v32, %v1528_v26  ;;  %v649_v6 = vshrl.u32 %v648_v10, 7 }
 0x2e7   : > { %v620_v36 = vmul.f32 %v612_v22, %v1524_v24  ;;  %v623_v39 = vmul.f32 %v615_v33, %v1530_v14  ;;  %v624_v40 = vadd.f32 %v618_v34, %v616_v29  ;;  %v647_v5 = vunpack.c.0.s8 %v646_v59  ;;  %v606_v11 = vld [vmem:[#allocation10] sm:$0x3] }
 0x2e8   : > { %v633_v41 = vadd.f32 %v619_v35, %v617_v30  ;;  %vm663_vm1 = vcmp.lt.s32.totalorder %v648_v10, 256 }
 0x2e9   : > { %v625_v42 = vadd.f32 %v624_v40, %v620_v36  ;;  %v650_v7 = vsub.s32 %v647_v5, %v649_v6 }
 0x2ea   : > { %v634_v43 = vadd.f32 %v633_v41, %v621_v37 }
 0x2eb   : > { %v626_v44 = vadd.f32 %v625_v42, %v622_v38 }
 0x2ec   : > { %v635_v45 = vadd.f32 %v634_v43, %v623_v39 }
 0x2ed   : > { %v627_v54 = vrot.slane %v626_v44, 4 }
 0x2ee   : > { %v636_v55 = vrot.slane %v635_v45, 4 }
 0x2ef   : > { %v628_v56 = vadd.f32 %v627_v54, %v626_v44 }
 0x2f0   : > { %v637_v57 = vadd.f32 %v636_v55, %v635_v45 }
 0x2f1   : > { %v629_v60 = vrot.slane %v628_v56, 2 }
 0x2f2   : > { %v638_v61 = vrot.slane %v637_v57, 2 }
 0x2f3   : > { %v630_v0 = vadd.f32 %v629_v60, %v628_v56 }
 0x2f4   : > { %v639_v2 = vadd.f32 %v638_v61, %v637_v57 }
 0x2f5   : > { %v631_v46 = vrot.slane %v630_v0, 1 }
 0x2f6   : > { %v640_v47 = vrot.slane %v639_v2, 1 }
 0x2f7   : > { %v632_v48 = vadd.f32 %v631_v46, %v630_v0 }
 0x2f8   : > { %v641_v49 = vadd.f32 %v640_v47, %v639_v2 }
 0x2fa   : > { %v644_v8 = vcombine.low %v632_v48, %v641_v49 }
 0x2fc   : > { %v651_v9 = vrot.slane %v644_v8, %v650_v7 }
 0x2fe   : > { %v658_v50 = vrot.slane %v651_v9, %v650_v7 }
 0x300   : > { %v660_v51 = vadd.f32 %v658_v50, %v606_v11 }
 0x302   : > { %665 = vst.msk [vmem:[#allocation10] sm:$0x3] %vm663_vm1, %v660_v51 }
 0x303 PF: > { %p934_p1 = scmp.ne.s32.totalorder %s1258_s23, 1 }
 0x305   : > { %669 = sbr.rel (%p934_p1) target bundleno = 809 (0x329), region = 52 }
 0x30a   : > { %v671_v52 = vld [vmem:[#allocation2 + $0x30] sm:$0xff]  ;;  %v672_v53 = vld [vmem:[#allocation2] sm:$0xff]  ;;  %v673_v12 = vld [vmem:[#allocation2 + $0x58] sm:$0xff]  ;;  %v1275_v39 = vmov 1966171168   ;;  %v711_v41 = vlaneseq }
 0x30b   : > { %v674_v15 = vld [vmem:[#allocation2 + $0x18] sm:$0xff]  ;;  %v675_v18 = vld [vmem:[#allocation2 + $0x50] sm:$0xff]  ;;  %v679_v20 = vmul.f32 %v671_v52, %v1516_v19  ;;  %v680_v62 = vmul.f32 %v672_v53, %v1518_v13  ;;  %v676_v63 = vld [vmem:[#allocation2 + $0x68] sm:$0xff]  ;;  %v681_v25 = vmul.f32 %v673_v12, %v1520_v4  ;;  %v709_v40 = vunpack.c.l.s4 %v1275_v39 }
 0x30c   : > { %v677_v3 = vld [vmem:[#allocation2 + $0x8] sm:$0xff]  ;;  %v682_v16 = vmul.f32 %v674_v15, %v1522_v23  ;;  %v683_v27 = vmul.f32 %v675_v18, %v1524_v24  ;;  %v684_v21 = vmul.f32 %v676_v63, %v1526_v1  ;;  %v712_v55 = vshrl.u32 %v711_v41, 7  ;;  %v670_v0 = vld [vmem:[#allocation10] sm:$0x3] }
 0x30d   : > { %v678_v17 = vld [vmem:[#allocation2 + $0x48] sm:$0xff]  ;;  %v685_v28 = vmul.f32 %v677_v3, %v1528_v26  ;;  %v687_v29 = vadd.f32 %v681_v25, %v679_v20  ;;  %v710_v54 = vunpack.c.0.s8 %v709_v40  ;;  %vm726_vm2 = vcmp.lt.s32.totalorder %v711_v41, 256 }
 0x30e   : > { %v686_v22 = vmul.f32 %v678_v17, %v1530_v14  ;;  %v696_v30 = vadd.f32 %v682_v16, %v680_v62 }
 0x30f   : > { %v688_v31 = vadd.f32 %v687_v29, %v683_v27  ;;  %v713_v10 = vsub.s32 %v710_v54, %v712_v55 }
 0x310   : > { %v697_v32 = vadd.f32 %v696_v30, %v684_v21 }
 0x311   : > { %v689_v33 = vadd.f32 %v688_v31, %v685_v28 }
 0x312   : > { %v698_v34 = vadd.f32 %v697_v32, %v686_v22 }
 0x313   : > { %v690_v35 = vrot.slane %v689_v33, 4 }
 0x314   : > { %v699_v36 = vrot.slane %v698_v34, 4 }
 0x315   : > { %v691_v37 = vadd.f32 %v690_v35, %v689_v33 }
 0x316   : > { %v700_v38 = vadd.f32 %v699_v36, %v698_v34 }
 0x317   : > { %v692_v42 = vrot.slane %v691_v37, 2 }
 0x318   : > { %v701_v43 = vrot.slane %v700_v38, 2 }
 0x319   : > { %v693_v44 = vadd.f32 %v692_v42, %v691_v37 }
 0x31a   : > { %v702_v45 = vadd.f32 %v701_v43, %v700_v38 }
 0x31b   : > { %v694_v56 = vrot.slane %v693_v44, 1 }
 0x31c   : > { %v703_v57 = vrot.slane %v702_v45, 1 }
 0x31d   : > { %v695_v58 = vadd.f32 %v694_v56, %v693_v44 }
 0x31e   : > { %v704_v59 = vadd.f32 %v703_v57, %v702_v45 }
 0x320   : > { %v707_v60 = vcombine.low %v695_v58, %v704_v59 }
 0x322   : > { %v714_v61 = vrot.slane %v707_v60, %v713_v10 }
 0x324   : > { %v721_v2 = vrot.slane %v714_v61, %v713_v10 }
 0x326   : > { %v723_v5 = vadd.f32 %v721_v2, %v670_v0 }
 0x328   : > { %728 = vst.msk [vmem:[#allocation10] sm:$0x3] %vm726_vm2, %v723_v5 }
 0x329 PF: > { %p935_p4 = scmp.lt.s32.totalorder %s1258_s23, 2 }
 0x32b   : > { %732 = sbr.rel (%p935_p4) target bundleno = 851 (0x353), region = 56 }
 0x330   : > { %v734_v6 = vld [vmem:[#allocation2 + $0x30] sm:$0xff]  ;;  %v735_v46 = vld [vmem:[#allocation2] sm:$0xff]  ;;  %v736_v47 = vld [vmem:[#allocation2 + $0x58] sm:$0xff]  ;;  %v1276_v41 = vmov 1966171168   ;;  %v791_v42 = vlaneseq }
 0x331   : > { %v737_v48 = vld [vmem:[#allocation2 + $0x18] sm:$0xff]  ;;  %v738_v49 = vld [vmem:[#allocation2 + $0x50] sm:$0xff]  ;;  %v739_v7 = vld [vmem:[#allocation2 + $0x68] sm:$0xff] }
 0x332   : > { %v740_v8 = vld [vmem:[#allocation2 + $0x8] sm:$0xff]  ;;  %v743_v11 = vld [vmem:[#allocation2 + $0x40] sm:$0xff]  ;;  %v745_v51 = vld [vmem:[#allocation2 + $0x10] sm:$0xff]  ;;  %v792_v45 = vshrl.u32 %v791_v42, 7  ;;  %vm806_vm3 = vcmp.lt.s32.totalorder %v791_v42, 256 }
 0x333   : > { %v741_v9 = vld [vmem:[#allocation2 + $0x48] sm:$0xff]  ;;  %v744_v50 = vld [vmem:[#allocation2 + $0x20] sm:$0xff]  ;;  %v746_v52 = vld [vmem:[#allocation2 + $0x38] sm:$0xff]  ;;  %v751_v15 = vadd.f32 %v743_v11, %v734_v6  ;;  %v753_v20 = vadd.f32 %v745_v51, %v736_v47 }
 0x334   : > { %v747_v53 = vld [vmem:[#allocation2 + $0x60] sm:$0xff]  ;;  %v748_v12 = vld [vmem:[#allocation2 + $0x70] sm:$0xff]  ;;  %v752_v18 = vadd.f32 %v744_v50, %v735_v46  ;;  %v749_v62 = vld [vmem:[#allocation2 + $0x78] sm:$0xff]  ;;  %v754_v3 = vadd.f32 %v746_v52, %v737_v48 }
 0x335   : > { %v750_v63 = vld [vmem:[#allocation2 + $0x28] sm:$0xff]  ;;  %v755_v17 = vadd.f32 %v747_v53, %v738_v49  ;;  %v756_v25 = vadd.f32 %v748_v12, %v739_v7  ;;  %v757_v16 = vadd.f32 %v749_v62, %v740_v8  ;;  %v759_v21 = vmul.f32 %v751_v15, %v1516_v19  ;;  %v733_v10 = vld [vmem:[#allocation10] sm:$0x3] }
 0x336   : > { %v758_v27 = vadd.f32 %v750_v63, %v741_v9  ;;  %v760_v28 = vmul.f32 %v752_v18, %v1518_v13  ;;  %v761_v22 = vmul.f32 %v753_v20, %v1520_v4  ;;  %v762_v29 = vmul.f32 %v754_v3, %v1522_v23 }
 0x337   : > { %v763_v30 = vmul.f32 %v755_v17, %v1524_v24  ;;  %v764_v31 = vmul.f32 %v756_v25, %v1526_v1  ;;  %v765_v32 = vmul.f32 %v757_v16, %v1528_v26  ;;  %v789_v23 = vunpack.c.l.s4 %v1276_v41 }
 0x338   : > { %v766_v33 = vmul.f32 %v758_v27, %v1530_v14  ;;  %v767_v34 = vadd.f32 %v761_v22, %v759_v21  ;;  %v776_v35 = vadd.f32 %v762_v29, %v760_v28 }
 0x339   : > { %v790_v26 = vunpack.c.0.s8 %v789_v23 }
 0x33a   : > { %v768_v36 = vadd.f32 %v767_v34, %v763_v30  ;;  %v777_v37 = vadd.f32 %v776_v35, %v764_v31 }
 0x33b   : > { %v793_v57 = vsub.s32 %v790_v26, %v792_v45 }
 0x33c   : > { %v769_v38 = vadd.f32 %v768_v36, %v765_v32  ;;  %v778_v19 = vadd.f32 %v777_v37, %v766_v33 }
 0x33e   : > { %v770_v39 = vrot.slane %v769_v38, 4  ;;  %v779_v13 = vrot.slane %v778_v19, 4 }
 0x340   : > { %v771_v40 = vadd.f32 %v770_v39, %v769_v38  ;;  %v780_v4 = vadd.f32 %v779_v13, %v778_v19 }
 0x342   : > { %v772_v24 = vrot.slane %v771_v40, 2  ;;  %v781_v43 = vrot.slane %v780_v4, 2 }
 0x344   : > { %v773_v1 = vadd.f32 %v772_v24, %v771_v40  ;;  %v782_v44 = vadd.f32 %v781_v43, %v780_v4 }
 0x346   : > { %v774_v14 = vrot.slane %v773_v1, 1  ;;  %v783_v54 = vrot.slane %v782_v44, 1 }
 0x348   : > { %v775_v55 = vadd.f32 %v774_v14, %v773_v1  ;;  %v784_v56 = vadd.f32 %v783_v54, %v782_v44 }
 0x34a   : > { %v787_v58 = vcombine.low %v775_v55, %v784_v56 }
 0x34c   : > { %v794_v59 = vrot.slane %v787_v58, %v793_v57 }
 0x34e   : > { %v801_v60 = vrot.slane %v794_v59, %v793_v57 }
 0x350   : > { %v803_v61 = vadd.f32 %v801_v60, %v733_v10 }
 0x352   : > { %808 = vst.msk [vmem:[#allocation10] sm:$0x3] %vm806_vm3, %v803_v61 }
 0x353 PF: > { %p1562_p10 = scmp.eq.s32.totalorder %s922_s0, 3  ;;  %s1277_s9 = smov [#allocation10]  }
 0x354   : > { %s819_s10 = sshll.u32 %s1277_s9, 4  ;;  %s1278_s29 = smov [#allocation11]   ;;  %s820_s10 = int_to_ptr.vmem [resolvable:$true] %s819_s10 }
 0x355   : > { %s833_s30 = sshll.u32 %s1278_s29, 4  ;;  %s1156_s6 = scalar_lea.vmem %s820_s10, 32  ;;  %s834_s30 = int_to_ptr.vmem [resolvable:$true] %s833_s30 }
 0x356   : > { %p1157_p11 = scmp.ne.s32.totalorder %s820_s10, %s1156_s6  ;;  %p1163_p13 = scmp.lt.s32.totalorder %s820_s10, %s820_s10 }
 0x357   : > { %p1164_p0 = scmp.lt.s32.totalorder %s1156_s6, %s1156_s6 }
 0x358   : > { %p1158_p7 = pnand %p1157_p11, %p1562_p10 }
 0x359   : > { %p1165_p2 = por %p1164_p0, %p1163_p13 }
 0x35a   : > { %p1159_p12 = pneg %p1158_p7 }
 0x35c   : > { %p1166_p3 = pnand %p1165_p2, %p1159_p12 }
 0x35e   : > { %1169 = shalt.err (!%p1166_p3)
}
 0x35f   : > { %950 = dma.vmem_to_hbm [thread:$0]  (%p1562_p10), %s820_s10, 32, %s1610_s4, [#allocation7]  }
 0x360   : > { %s1180_s11 = scalar_lea.vmem %s834_s30, 32  ;;  %p1187_p5 = scmp.lt.s32.totalorder %s834_s30, %s834_s30 }
 0x361   : > { %p1181_p6 = scmp.ne.s32.totalorder %s834_s30, %s1180_s11  ;;  %p1188_p1 = scmp.lt.s32.totalorder %s1180_s11, %s1180_s11 }
 0x363   : > { %p1182_p8 = pnand %p1181_p6, %p1562_p10  ;;  %p1189_p4 = por %p1188_p1, %p1187_p5 }
 0x365   : > { %p1183_p9 = pneg %p1182_p8 }
 0x367   : > { %p1190_p11 = pnand %p1189_p4, %p1183_p9 }
 0x369   : > { %1193 = shalt.err (!%p1190_p11)
}
 0x36a   : > { %952 = dma.vmem_to_hbm [thread:$0]  (%p1562_p10), %s834_s30, 32, %s1611_s5, [#allocation12]  }
 0x36b   : > { %1237 = dma.done.wait (%p1562_p10), [#allocation7], 32  }
 0x36c   : > { %1239 = vsyncadd (%p1562_p10), [#allocation7], 4294967264 }
 0x36d   : > { %1241 = dma.done.wait (%p1562_p10), [#allocation12], 32  }
 0x36e   : > { %1243 = vsyncadd (%p1562_p10), [#allocation12], 4294967264 }
 0x36f PF: > { %s23_s25 = sadd.s32 1, %s1266_s25   ;;  %s1620_s20 = smov %s1250_s21 }
 0x370   : > { %p20_p7 = scmp.ge.s32.totalorder %s23_s25, 6   ;;  %s1621_s21 = smov %s1254_s22 }
 0x371   : > { %s1622_s22 = smov %s1391_s18  ;;  %s1623_s23 = smov %s1262_s24 }
 0x372   : > { %s1624_s24 = smov %s1626_s7  ;;  %22 = sbr.rel (!%p20_p7) target bundleno = 9 (0x9), region = 103 }
 0x377   :  { %850 = vsyncpa [#allocation6], 1 }
 0x378   :  { %852 = vsyncpa [#allocation6 + $0x1], 1 }
 0x379   :  { %853 = vsyncpa [#allocation9], 1 }
 0x37a   :  { %854 = vsyncpa [#allocation7], 1 }
 0x37b   :  { %856 = vsyncpa [#allocation7 + $0x1], 1 }
 0x37c   :  { %857 = vsyncpa [#allocation12], 1 }

</bundles_post_ra>
